<compile_context>
chip_gen: v6e
topology: v6e:2x2x1
jax: 0.10.0
libtpu: 0.0.40
codegen_flags: <defaults>
</compile_context>

<pallas_src>
import jax
import jax.numpy as jnp
from jax import lax
from jax.experimental import pallas as pl
from jax.experimental.pallas import tpu as pltpu  # noqa: F401  (kept for at-scale plan)

_EPS = 1e-8   # torch.nn.functional.cosine_similarity default eps
_LANE = 128


def _recommend_kernel(job_ref, major_ref, subj_ref, out_ref):
    """job_ref [J,D], major_ref [M,D], subj_ref [S,D] -> out_ref [J, M*S]."""
    job = job_ref[...]       # [J, D] f32
    major = major_ref[...]   # [M, D] f32
    subj = subj_ref[...]     # [S, D] f32

    D = job.shape[1]
    M = major.shape[0]
    S = subj.shape[0]

    # Contract the last dim of both operands -> MXU gets K-last layout for both
    # sides, no explicit transpose of the RHS.
    dims = (((1,), (1,)), ((), ()))

    def dot_t(a, b):
        return lax.dot_general(a, b, dims, preferred_element_type=jnp.float32)

    # Squared elements bound once, reused for column reductions and row matmuls.
    sq_major = major * major                                   # [M, D]
    sq_subj = subj * subj                                      # [S, D]

    # Column (sublane-axis) squared norms via VPU reductions.
    w_job = jnp.sum(job * job, axis=-1, keepdims=True)         # [J, 1]
    w_major = jnp.sum(sq_major, axis=-1, keepdims=True)        # [M, 1]
    # Row (lane-axis) squared norms via a tiny ones @ sq MXU matmul (avoids an
    # XLU transpose of a column vector).
    ones_row = jnp.ones((1, D), jnp.float32)
    w_major_row = dot_t(ones_row, sq_major)                    # [1, M]
    w_subj_row = dot_t(ones_row, sq_subj)                      # [1, S]

    eps2 = jnp.float32(_EPS * _EPS)
    # ATen cosine_similarity: w12 * rsqrt(clamp(w1 * w2, eps^2))
    jm = dot_t(job, major) * lax.rsqrt(jnp.maximum(w_job * w_major_row, eps2))    # [J, M]
    ms = dot_t(major, subj) * lax.rsqrt(jnp.maximum(w_major * w_subj_row, eps2))  # [M, S]

    # out[j, m*S + s] = jm[j, m] * ms[m, s].  Per-m (J, S) tiles land at lane
    # offsets m*S -> aligned, unmasked stores when S % 128 == 0.
    # (M is tiny here; at scale `m` becomes a parallel grid axis instead of a
    # static Python unroll.)
    for m in range(M):
        out_ref[:, m * S:(m + 1) * S] = jm[:, m:m + 1] * ms[m:m + 1, :]


def _pad_lanes(x, multiple=_LANE):
    """Zero-pad the last (feature) axis to a lane multiple; exact for this op
    (zeros change neither dot products nor squared norms)."""
    pad = (-x.shape[-1]) % multiple
    if pad:
        x = jnp.pad(x, ((0, 0), (0, pad)))
    return x


@jax.jit
def recommendation_forward(job_table, major_table, subj_table,
                           job_indices, major_indices, subject_indices):
    """Whole forward in one executable: gathers + kernel + flatten.

    Tables are pre-padded to a lane-multiple feature dim in __init__.
    Returns flat [J*M*S] f32, identical to PyTorch's .view(-1).
    """
    # Embedding lookups (gathers) fused into the same jit as the kernel.
    # TODO(synk): at realistic batch sizes fold these gathers into the kernel
    # via PrefetchScalarGridSpec(num_scalar_prefetch=3) with row-tile gathers
    # to avoid the HBM round trip of the gathered intermediates.
    job_e = job_table[job_indices]          # [J, D]
    major_e = major_table[major_indices]    # [M, D]
    subj_e = subj_table[subject_indices]    # [S, D]

    J, D = job_e.shape
    M = major_e.shape[0]
    S = subj_e.shape[0]

    out2d = pl.pallas_call(
        _recommend_kernel,
        out_shape=jax.ShapeDtypeStruct((J, M * S), jnp.float32),
        in_specs=[
            pl.BlockSpec((J, D), lambda: (0, 0)),
            pl.BlockSpec((M, D), lambda: (0, 0)),
            pl.BlockSpec((S, D), lambda: (0, 0)),
        ],
        out_specs=pl.BlockSpec((J, M * S), lambda: (0, 0)),
    )(job_e, major_e, subj_e)

    # Row-major flatten of (J, M*S) == (J, M, S).reshape(-1) == torch .view(-1)
    return out2d.reshape(-1)


class RecommendationModelPallas:
    """Parameters mirror nn.Embedding default init (N(0, 1)).

    Tables are stored zero-padded to a lane multiple (feature dim -> 128) so
    every forward call sees lane-aligned rows with no per-call padding work.
    """

    def __init__(self, num_jobs, num_majors, num_subjects, embedding_dim, key):
        kj, km, ks = jax.random.split(key, 3)
        self.job_embedding = _pad_lanes(jax.random.normal(
            kj, (num_jobs, embedding_dim), dtype=jnp.float32))
        self.major_embedding = _pad_lanes(jax.random.normal(
            km, (num_majors, embedding_dim), dtype=jnp.float32))
        self.subject_embedding = _pad_lanes(jax.random.normal(
            ks, (num_subjects, embedding_dim), dtype=jnp.float32))

    def __call__(self, job_indices, major_indices, subject_indices):
        return recommendation_forward(
            self.job_embedding, self.major_embedding, self.subject_embedding,
            job_indices, major_indices, subject_indices)


def _reference(model, job_idx, major_idx, subj_idx):
    """Pure-JAX reference using the exact ATen cosine_similarity formula.

    Padding zeros on the feature axis do not affect dots or norms, so using
    the padded tables is bit-identical to the unpadded computation.
    """
    je = model.job_embedding[job_idx].astype(jnp.float32)
    me = model.major_embedding[major_idx].astype(jnp.float32)
    se = model.subject_embedding[subj_idx].astype(jnp.float32)

    def cosine(a, b):
        w12 = a @ b.T
        w1 = jnp.sum(a * a, axis=-1, keepdims=True)
        w2 = jnp.sum(b * b, axis=-1, keepdims=True)
        return w12 / jnp.sqrt(jnp.maximum(w1 * w2.T, _EPS * _EPS))

    jm = cosine(je, me)                 # [J, M]
    ms = cosine(me, se)                 # [M, S]
    return (jm[:, :, None] * ms[None, :, :]).reshape(-1)


if __name__ == "__main__":
    key = jax.random.PRNGKey(0)
    k_model, _ = jax.random.split(key)

    num_jobs, num_majors, num_subjects = 20, 10, 200
    embedding_dim = 100   # matches the original PyTorch script

    model = RecommendationModelPallas(
        num_jobs, num_majors, num_subjects, embedding_dim, k_model)

    # Deterministic small index batches: J=8 jobs, M=4 majors, S=128 subjects
    # (S chosen as a lane multiple so the (J, M*S) output stores are unmasked).
    job_indices = jnp.arange(8, dtype=jnp.int32) % num_jobs
    major_indices = jnp.array([1, 3, 5, 7], dtype=jnp.int32)
    subject_indices = jnp.arange(128, dtype=jnp.int32) % num_subjects

    out = model(job_indices, major_indices, subject_indices)
    out = jax.block_until_ready(out)

    ref = _reference(model, job_indices, major_indices, subject_indices)
    assert out.shape == (job_indices.shape[0]
                         * major_indices.shape[0]
                         * subject_indices.shape[0],)
    assert jnp.allclose(out, ref, atol=1e-4, rtol=1e-4), (
        float(jnp.max(jnp.abs(out - ref))))

    print("KERNEL_OK")
</pallas_src>

<mosaic_0001>
module attributes {stable_mosaic.version = 11 : i64} {
  func.func @_recommend_kernel(%arg0: memref<8x128xf32, #tpu.memory_space<vmem>>, %arg1: memref<4x128xf32, #tpu.memory_space<vmem>>, %arg2: memref<128x128xf32, #tpu.memory_space<vmem>>, %arg3: memref<8x512xf32, #tpu.memory_space<vmem>>) attributes {dimension_semantics = [], scalar_prefetch = 0 : i64, scratch_operands = 0 : i64, tpu.core_type = #tpu.core_type<tc>} {
    %c0 = arith.constant 0 : index
    %c0_0 = arith.constant 0 : index
    %0 = vector.load %arg0[%c0, %c0_0] : memref<8x128xf32, #tpu.memory_space<vmem>>, vector<8x128xf32>
    %c0_1 = arith.constant 0 : index
    %c0_2 = arith.constant 0 : index
    %1 = vector.load %arg1[%c0_1, %c0_2] : memref<4x128xf32, #tpu.memory_space<vmem>>, vector<4x128xf32>
    %c0_3 = arith.constant 0 : index
    %c0_4 = arith.constant 0 : index
    %2 = vector.load %arg2[%c0_3, %c0_4] : memref<128x128xf32, #tpu.memory_space<vmem>>, vector<128x128xf32>
    %3 = arith.mulf %1, %1 : vector<4x128xf32>
    %4 = arith.mulf %2, %2 : vector<128x128xf32>
    %5 = arith.mulf %0, %0 : vector<8x128xf32>
    %cst = arith.constant dense<0.000000e+00> : vector<8xf32>
    %6 = vector.multi_reduction <add>, %5, %cst [1] : vector<8x128xf32> to vector<8xf32>
    %7 = vector.shape_cast %6 : vector<8xf32> to vector<8x1xf32>
    %cst_5 = arith.constant dense<0.000000e+00> : vector<4xf32>
    %8 = vector.multi_reduction <add>, %3, %cst_5 [1] : vector<4x128xf32> to vector<4xf32>
    %9 = vector.shape_cast %8 : vector<4xf32> to vector<4x1xf32>
    %cst_6 = arith.constant 1.000000e+00 : f32
    %10 = vector.broadcast %cst_6 : f32 to vector<1x128xf32>
    %cst_7 = arith.constant dense<0.000000e+00> : vector<1x4xf32>
    %11 = tpu.matmul %10, %3, %cst_7 {dimension_numbers = #tpu.dot_dimension_numbers<[1], [1], [0], [0], [0, 0, 1, 0], [], []>} : vector<1x128xf32>, vector<4x128xf32>, vector<1x4xf32> -> vector<1x4xf32>
    %cst_8 = arith.constant dense<0.000000e+00> : vector<1x128xf32>
    %12 = tpu.matmul %10, %4, %cst_8 {dimension_numbers = #tpu.dot_dimension_numbers<[1], [1], [0], [0], [0, 0, 1, 0], [], []>} : vector<1x128xf32>, vector<128x128xf32>, vector<1x128xf32> -> vector<1x128xf32>
    %cst_9 = arith.constant dense<0.000000e+00> : vector<8x4xf32>
    %13 = tpu.matmul %0, %1, %cst_9 {dimension_numbers = #tpu.dot_dimension_numbers<[1], [1], [0], [0], [0, 0, 1, 0], [], []>} : vector<8x128xf32>, vector<4x128xf32>, vector<8x4xf32> -> vector<8x4xf32>
    %14 = vector.broadcast %7 : vector<8x1xf32> to vector<8x4xf32>
    %15 = vector.broadcast %11 : vector<1x4xf32> to vector<8x4xf32>
    %16 = arith.mulf %14, %15 : vector<8x4xf32>
    %cst_10 = arith.constant 1.000000e-16 : f32
    %17 = vector.broadcast %cst_10 : f32 to vector<8x4xf32>
    %18 = arith.maximumf %16, %17 : vector<8x4xf32>
    %19 = math.rsqrt %18 : vector<8x4xf32>
    %20 = arith.mulf %13, %19 : vector<8x4xf32>
    %cst_11 = arith.constant dense<0.000000e+00> : vector<4x128xf32>
    %21 = tpu.matmul %1, %2, %cst_11 {dimension_numbers = #tpu.dot_dimension_numbers<[1], [1], [0], [0], [0, 0, 1, 0], [], []>} : vector<4x128xf32>, vector<128x128xf32>, vector<4x128xf32> -> vector<4x128xf32>
    %22 = vector.broadcast %9 : vector<4x1xf32> to vector<4x128xf32>
    %23 = vector.broadcast %12 : vector<1x128xf32> to vector<4x128xf32>
    %24 = arith.mulf %22, %23 : vector<4x128xf32>
    %cst_12 = arith.constant 1.000000e-16 : f32
    %25 = vector.broadcast %cst_12 : f32 to vector<4x128xf32>
    %26 = arith.maximumf %24, %25 : vector<4x128xf32>
    %27 = math.rsqrt %26 : vector<4x128xf32>
    %28 = arith.mulf %21, %27 : vector<4x128xf32>
    %29 = vector.extract_strided_slice %20 {offsets = [0, 0], sizes = [8, 1], strides = [1, 1]} : vector<8x4xf32> to vector<8x1xf32>
    %30 = vector.extract_strided_slice %28 {offsets = [0, 0], sizes = [1, 128], strides = [1, 1]} : vector<4x128xf32> to vector<1x128xf32>
    %31 = vector.broadcast %29 : vector<8x1xf32> to vector<8x128xf32>
    %32 = vector.broadcast %30 : vector<1x128xf32> to vector<8x128xf32>
    %33 = arith.mulf %31, %32 : vector<8x128xf32>
    %c0_13 = arith.constant 0 : index
    %c0_14 = arith.constant 0 : index
    %34 = vector.load %arg3[%c0_13, %c0_14] : memref<8x512xf32, #tpu.memory_space<vmem>>, vector<8x128xf32>
    tpu.vector_store %arg3[%c0_13, %c0_14], %33 {strides = array<i32>} : memref<8x512xf32, #tpu.memory_space<vmem>>, vector<8x128xf32>,
    %35 = vector.extract_strided_slice %20 {offsets = [0, 1], sizes = [8, 1], strides = [1, 1]} : vector<8x4xf32> to vector<8x1xf32>
    %36 = vector.extract_strided_slice %28 {offsets = [1, 0], sizes = [1, 128], strides = [1, 1]} : vector<4x128xf32> to vector<1x128xf32>
    %37 = vector.broadcast %35 : vector<8x1xf32> to vector<8x128xf32>
    %38 = vector.broadcast %36 : vector<1x128xf32> to vector<8x128xf32>
    %39 = arith.mulf %37, %38 : vector<8x128xf32>
    %c0_15 = arith.constant 0 : index
    %c128 = arith.constant 128 : index
    %40 = vector.load %arg3[%c0_15, %c128] : memref<8x512xf32, #tpu.memory_space<vmem>>, vector<8x128xf32>
    tpu.vector_store %arg3[%c0_15, %c128], %39 {strides = array<i32>} : memref<8x512xf32, #tpu.memory_space<vmem>>, vector<8x128xf32>,
    %41 = vector.extract_strided_slice %20 {offsets = [0, 2], sizes = [8, 1], strides = [1, 1]} : vector<8x4xf32> to vector<8x1xf32>
    %42 = vector.extract_strided_slice %28 {offsets = [2, 0], sizes = [1, 128], strides = [1, 1]} : vector<4x128xf32> to vector<1x128xf32>
    %43 = vector.broadcast %41 : vector<8x1xf32> to vector<8x128xf32>
    %44 = vector.broadcast %42 : vector<1x128xf32> to vector<8x128xf32>
    %45 = arith.mulf %43, %44 : vector<8x128xf32>
    %c0_16 = arith.constant 0 : index
    %c256 = arith.constant 256 : index
    %46 = vector.load %arg3[%c0_16, %c256] : memref<8x512xf32, #tpu.memory_space<vmem>>, vector<8x128xf32>
    tpu.vector_store %arg3[%c0_16, %c256], %45 {strides = array<i32>} : memref<8x512xf32, #tpu.memory_space<vmem>>, vector<8x128xf32>,
    %47 = vector.extract_strided_slice %20 {offsets = [0, 3], sizes = [8, 1], strides = [1, 1]} : vector<8x4xf32> to vector<8x1xf32>
    %48 = vector.extract_strided_slice %28 {offsets = [3, 0], sizes = [1, 128], strides = [1, 1]} : vector<4x128xf32> to vector<1x128xf32>
    %49 = vector.broadcast %47 : vector<8x1xf32> to vector<8x128xf32>
    %50 = vector.broadcast %48 : vector<1x128xf32> to vector<8x128xf32>
    %51 = arith.mulf %49, %50 : vector<8x128xf32>
    %c0_17 = arith.constant 0 : index
    %c384 = arith.constant 384 : index
    %52 = vector.load %arg3[%c0_17, %c384] : memref<8x512xf32, #tpu.memory_space<vmem>>, vector<8x128xf32>
    tpu.vector_store %arg3[%c0_17, %c384], %51 {strides = array<i32>} : memref<8x512xf32, #tpu.memory_space<vmem>>, vector<8x128xf32>,
    return
  }
}

</mosaic_0001>

<bundles_post_ra>
// kernel: recommendation_forward.1
= control target key start
LH: loop header
LB: loop body
LE: loop exit
PB: predicated region body
PF: predicated region fallthrough
CT: control target
= control target key end

     0   :  { %v531_v0 = vmov 0.0   ;;  %vm532_vm0 = vmmov 0   ;;  %vm52_vm1 = vcmask 1043456   ;;  %v533_v8 = vmov 1.0   ;;  %s674_s1 = inlined_call_operand.vmem [shape: f32[4,128], index: 1, kind: input, shape index: {}]   ;;  %s675_s0 = inlined_call_operand.vmem [shape: f32[8,128], index: 0, kind: input, shape index: {}]   ;;  %s676_s2 = inlined_call_operand.vmem [shape: f32[128,128], index: 2, kind: input, shape index: {}]   ;;  %s677_s3 = inlined_call_operand.vmem [shape: f32[8,512], index: 3, kind: output, shape index: {}]  }
   0x1   :  { %435 = vmatprep.subr.mxu1 %v531_v0  ;;  %v562_v1 = vld [vmem:[%s674_s1] sm:$0xf]  ;;  %437 = vmatprep.mubr.msk.f32.mxu1 %vm532_vm0, %v531_v0  ;;  %v31_v3 = vld [vmem:[%s676_s2 + $0x78] sm:$0xff]  ;;  %v30_v7 = vld [vmem:[%s676_s2 + $0x70] sm:$0xff]  ;;  %v534_v39 = vmov 2   ;;  %v535_v40 = vmov 0   ;;  %v266_v41 = vlaneseq }
   0x2   :  { %v14_v2 = vld [vmem:[%s675_s0] sm:$0xff]  ;;  %v32_v4 = vmul.f32 %v562_v1, %v562_v1  ;;  %475 = vmatprep.subr.mxu0 %v531_v0  ;;  %477 = vmatprep.mubr.msk.f32.mxu0 %vm532_vm0, %v531_v0  ;;  %v48_v6 = vmul.f32 %v31_v3, %v31_v3  ;;  %v47_v10 = vmul.f32 %v30_v7, %v30_v7  ;;  %v29_v11 = vld [vmem:[%s676_s2 + $0x68] sm:$0xff]  ;;  %v27_v15 = vld [vmem:[%s676_s2 + $0x58] sm:$0xff]  ;;  %v536_v54 = vmov 1  }
   0x3   :  { %v49_v5 = vmul.f32 %v14_v2, %v14_v2  ;;  %476 = vmatpush3.xpose.msra.mxu0 %v562_v1  ;;  %v46_v12 = vmul.f32 %v29_v11, %v29_v11  ;;  %v28_v13 = vld [vmem:[%s676_s2 + $0x60] sm:$0xff]  ;;  %v44_v16 = vmul.f32 %v27_v15, %v27_v15  ;;  %v26_v17 = vld [vmem:[%s676_s2 + $0x50] sm:$0xff]  ;;  %v25_v19 = vld [vmem:[%s676_s2 + $0x48] sm:$0xff]  ;;  %524 = vset.pattern.permute.xlu0 %v534_v39  ;;  %v267_v42 = vshrl.u32 %v266_v41, 7 }
   0x4   :  { %436 = vmatpush3.xpose.msra.mxu1 %v32_v4  ;;  %480 = vmatprep.subr.mxu0 %v531_v0  ;;  %v53_v9 = vsel %vm52_vm1, %v32_v4, 0.0  ;;  %v45_v14 = vmul.f32 %v28_v13, %v28_v13  ;;  %v43_v18 = vmul.f32 %v26_v17, %v26_v17  ;;  %v42_v20 = vmul.f32 %v25_v19, %v25_v19  ;;  %v24_v21 = vld [vmem:[%s676_s2 + $0x40] sm:$0xff]  ;;  %v23_v23 = vld [vmem:[%s676_s2 + $0x38] sm:$0xff]  ;;  %v22_v25 = vld [vmem:[%s676_s2 + $0x30] sm:$0xff] }
   0x5   :  { %50 = vadd.xlane.f32.xlu0 %v49_v5  ;;  %440 = vmatprep.subr.mxu1 %v531_v0  ;;  %v41_v22 = vmul.f32 %v24_v21, %v24_v21  ;;  %v40_v24 = vmul.f32 %v23_v23, %v23_v23  ;;  %v39_v26 = vmul.f32 %v22_v25, %v22_v25  ;;  %v21_v27 = vld [vmem:[%s676_s2 + $0x28] sm:$0xff]  ;;  %v20_v29 = vld [vmem:[%s676_s2 + $0x20] sm:$0xff]  ;;  %v19_v31 = vld [vmem:[%s676_s2 + $0x18] sm:$0xff]  ;;  %v268_v43 = vsub.s32 0, %v267_v42 }
   0x6   :  { %478 = vmatmul.mubr.f32.vlgmr.msra.gmra.mxu0 %v14_v2  ;;  %v38_v28 = vmul.f32 %v21_v27, %v21_v27  ;;  %v37_v30 = vmul.f32 %v20_v29, %v20_v29  ;;  %v36_v32 = vmul.f32 %v19_v31, %v19_v31  ;;  %v18_v33 = vld [vmem:[%s676_s2 + $0x10] sm:$0xff]  ;;  %v17_v35 = vld [vmem:[%s676_s2 + $0x8] sm:$0xff]  ;;  %v16_v37 = vld [vmem:[%s676_s2] sm:$0xff]  ;;  %522 = vset.pattern.permute.xlu1 %v535_v40  ;;  %v537_v55 = vmov 3  }
   0x7   :  { %438 = vmatmul.mubr.f32.vlgmr.msra.gmra.mxu1 %v533_v8  ;;  %481 = vmatpush3.xpose.msra.mxu0 %v31_v3  ;;  %v35_v34 = vmul.f32 %v18_v33, %v18_v33  ;;  %v34_v36 = vmul.f32 %v17_v35, %v17_v35  ;;  %v33_v38 = vmul.f32 %v16_v37, %v16_v37  ;;  %v379_v2 = vsub.s32 2, %v267_v42 }
   0x8   :  { %441 = vmatpush3.xpose.msra.mxu1 %v48_v6  ;;  %482 = vmatprep.subr.mxu0 %v531_v0  ;;  %v369_v5 = vsub.s32 1, %v267_v42 }
   0x9   :  { %442 = vmatprep.subr.mxu1 %v531_v0  ;;  %472 = vmatprep.mubr.msk.f32.mxu1 %vm532_vm0, %v531_v0 }
   0xa   :  { %512 = vmatprep.mubr.msk.f32.mxu0 %vm532_vm0, %v531_v0  ;;  %54 = vadd.xlane.f32.xlu0 %v53_v9 }
   0xb   :  { %483 = vmatpush3.xpose.msra.mxu0 %v30_v7 }
   0xc   :  { %443 = vmatpush3.xpose.msra.mxu1 %v47_v10  ;;  %484 = vmatprep.subr.mxu0 %v531_v0 }
   0xd   :  { %444 = vmatprep.subr.mxu1 %v531_v0 }
   0xf   :  { %485 = vmatpush3.xpose.msra.mxu0 %v29_v11  ;;  %v389_v11 = vsub.s32 3, %v267_v42 }
  0x10   :  { %445 = vmatpush3.xpose.msra.mxu1 %v46_v12  ;;  %486 = vmatprep.subr.mxu0 %v531_v0 }
  0x11   :  { %446 = vmatprep.subr.mxu1 %v531_v0 }
  0x13   :  { %487 = vmatpush3.xpose.msra.mxu0 %v28_v13 }
  0x14   :  { %447 = vmatpush3.xpose.msra.mxu1 %v45_v14  ;;  %488 = vmatprep.subr.mxu0 %v531_v0 }
  0x15   :  { %448 = vmatprep.subr.mxu1 %v531_v0 }
  0x17   :  { %489 = vmatpush3.xpose.msra.mxu0 %v27_v15 }
  0x18   :  { %449 = vmatpush3.xpose.msra.mxu1 %v44_v16  ;;  %490 = vmatprep.subr.mxu0 %v531_v0 }
  0x19   :  { %450 = vmatprep.subr.mxu1 %v531_v0 }
  0x1b   :  { %491 = vmatpush3.xpose.msra.mxu0 %v26_v17 }
  0x1c   :  { %451 = vmatpush3.xpose.msra.mxu1 %v43_v18  ;;  %492 = vmatprep.subr.mxu0 %v531_v0 }
  0x1d   :  { %452 = vmatprep.subr.mxu1 %v531_v0 }
  0x1f   :  { %493 = vmatpush3.xpose.msra.mxu0 %v25_v19 }
  0x20   :  { %453 = vmatpush3.xpose.msra.mxu1 %v42_v20  ;;  %494 = vmatprep.subr.mxu0 %v531_v0 }
  0x21   :  { %454 = vmatprep.subr.mxu1 %v531_v0 }
  0x23   :  { %495 = vmatpush3.xpose.msra.mxu0 %v24_v21 }
  0x24   :  { %455 = vmatpush3.xpose.msra.mxu1 %v41_v22  ;;  %496 = vmatprep.subr.mxu0 %v531_v0 }
  0x25   :  { %456 = vmatprep.subr.mxu1 %v531_v0 }
  0x27   :  { %497 = vmatpush3.xpose.msra.mxu0 %v23_v23 }
  0x28   :  { %457 = vmatpush3.xpose.msra.mxu1 %v40_v24  ;;  %498 = vmatprep.subr.mxu0 %v531_v0 }
  0x29   :  { %458 = vmatprep.subr.mxu1 %v531_v0 }
  0x2b   :  { %499 = vmatpush3.xpose.msra.mxu0 %v22_v25 }
  0x2c   :  { %459 = vmatpush3.xpose.msra.mxu1 %v39_v26  ;;  %500 = vmatprep.subr.mxu0 %v531_v0 }
  0x2d   :  { %460 = vmatprep.subr.mxu1 %v531_v0 }
  0x2f   :  { %501 = vmatpush3.xpose.msra.mxu0 %v21_v27 }
  0x30   :  { %461 = vmatpush3.xpose.msra.mxu1 %v38_v28  ;;  %502 = vmatprep.subr.mxu0 %v531_v0 }
  0x31   :  { %462 = vmatprep.subr.mxu1 %v531_v0 }
  0x33   :  { %503 = vmatpush3.xpose.msra.mxu0 %v20_v29 }
  0x34   :  { %463 = vmatpush3.xpose.msra.mxu1 %v37_v30  ;;  %504 = vmatprep.subr.mxu0 %v531_v0 }
  0x35   :  { %464 = vmatprep.subr.mxu1 %v531_v0 }
  0x37   :  { %505 = vmatpush3.xpose.msra.mxu0 %v19_v31 }
  0x38   :  { %465 = vmatpush3.xpose.msra.mxu1 %v36_v32  ;;  %506 = vmatprep.subr.mxu0 %v531_v0 }
  0x39   :  { %466 = vmatprep.subr.mxu1 %v531_v0 }
  0x3b   :  { %507 = vmatpush3.xpose.msra.mxu0 %v18_v33 }
  0x3c   :  { %467 = vmatpush3.xpose.msra.mxu1 %v35_v34  ;;  %508 = vmatprep.subr.mxu0 %v531_v0 }
  0x3d   :  { %468 = vmatprep.subr.mxu1 %v531_v0 }
  0x3f   :  { %509 = vmatpush3.xpose.msra.mxu0 %v17_v35 }
  0x40   :  { %469 = vmatpush3.xpose.msra.mxu1 %v34_v36  ;;  %510 = vmatprep.subr.mxu0 %v531_v0 }
  0x41   :  { %470 = vmatprep.subr.mxu1 %v531_v0 }
  0x43   :  { %511 = vmatpush3.xpose.msra.mxu0 %v16_v37 }
  0x44   :  { %471 = vmatpush3.xpose.msra.mxu1 %v33_v38 }
  0x46   :  { %513 = vmatmul.mubr.f32.vlgmr.msra.gmra.mxu0 %v562_v1 }
  0x47   :  { %473 = vmatmul.mubr.f32.vlgmr.msra.gmra.mxu1 %v533_v8 }
  0x8e   :  { %v51_v46 = vpop.xlane.xlu0 %50 }
  0x93   :  { %v55_v61 = vpop.xlane.xlu0 %54 }
  0xc6   :  { %v262_v44 = vpop.f32.mrf.mxu0 }
  0xc7   :  { %v122_v45 = vpop.f32.mrf.mxu1 }
  0xc8   :  { %v269_v47 = vrot.slane %v122_v45, %v268_v43  ;;  %v479_v48 = vpop.f32.mrf.mxu0 }
  0xc9   :  { %v439_v49 = vpop.f32.mrf.mxu1 }
  0xca   :  { %v270_v50 = vmul.f32 %v269_v47, %v51_v46 }
  0xcc   :  { %v271_v51 = vmax.f32 %v270_v50, 1e-16 }
  0xce   :  { %527 = vrsqrt.f32 %v271_v51 }
  0xdb   :  { %v528_v52 = vpop.eup %527 }
  0xdc   :  { %v273_v53 = vmul.f32 %v528_v52, %v262_v44 }
  0xde   :  { %374 = vperm.xlu0 %524, %v273_v53   ;;  %354 = vperm.xlu1 %522, %v273_v53  }
  0xe2   :  { %523 = vset.pattern.permute.xlu1 %v536_v54  ;;  %526 = vset.pattern.permute.xlu0 %v537_v55 }
  0xe3   :  { %364 = vperm.xlu1 %523, %v273_v53  }
  0xe7   :  { %525 = vset.pattern.permute.xlu1 %v537_v55 }
  0xe8   :  { %384 = vperm.xlu1 %525, %v273_v53  }
 0x106   :  { %v340_v56 = vpop.f32.mrf.mxu0 }
 0x107   :  { %v192_v57 = vpop.f32.mrf.mxu1 }
 0x108   :  { %v514_v58 = vpop.f32.mrf.mxu0  ;;  %v347_v60 = vrot.slane %v192_v57, %v268_v43 }
 0x109   :  { %v474_v59 = vpop.f32.mrf.mxu1 }
 0x10a   :  { %v348_v62 = vmul.f32 %v347_v60, %v55_v61 }
 0x10c   :  { %v349_v63 = vmax.f32 %v348_v62, 1e-16 }
 0x10e   :  { %529 = vrsqrt.f32 %v349_v63 }
 0x11b   :  { %v530_v0 = vpop.eup %529 }
 0x11c   :  { %v351_v1 = vmul.f32 %v530_v0, %v340_v56 }
 0x11e   :  { %v360_v3 = vrot.slane %v351_v1, %v268_v43  ;;  %v380_v4 = vrot.slane %v351_v1, %v379_v2  ;;  %v370_v10 = vrot.slane %v351_v1, %v369_v5  ;;  %v390_v14 = vrot.slane %v351_v1, %v389_v11 }
 0x159   :  { %v355_v6 = vpop.permute.xlu1 %354  ;;  %v375_v7 = vpop.permute.xlu0 %374 }
 0x15a   :  { %v361_v8 = vmul.f32 %v360_v3, %v355_v6  ;;  %v381_v9 = vmul.f32 %v380_v4, %v375_v7 }
 0x15c   :  { %362 = vst [vmem:[%s677_s3] sm:$0xff] %v361_v8  ;;  %382 = vst [vmem:[%s677_s3 + $0x10] sm:$0xff] %v381_v9 }
 0x15e   :  { %v365_v12 = vpop.permute.xlu1 %364 }
 0x15f   :  { %v371_v13 = vmul.f32 %v370_v10, %v365_v12 }
 0x161   :  { %372 = vst [vmem:[%s677_s3 + $0x8] sm:$0xff] %v371_v13 }
 0x163   :  { %v385_v15 = vpop.permute.xlu1 %384 }
 0x164   :  { %v391_v16 = vmul.f32 %v390_v14, %v385_v15 }
 0x166   :  { %392 = vst [vmem:[%s677_s3 + $0x18] sm:$0xff] %v391_v16 }

</bundles_post_ra>
